<compile_context>
chip_gen: v6e
topology: v6e:2x2x1
jax: 0.10.0
libtpu: 0.0.40
codegen_flags: <defaults>
</compile_context>

<pallas_src>
import functools

import jax
import jax.numpy as jnp
from jax.experimental import pallas as pl
from jax.experimental.pallas import tpu as pltpu

NEG_SLOPE = 0.01  # PyTorch nn.LeakyReLU default negative_slope
LANE = 128


def _leaky_relu(x):
    return jnp.where(x > 0, x, NEG_SLOPE * x)


def _round_up(n, m):
    return ((n + m - 1) // m) * m


def _pad2d(a, rows, cols):
    r, c = a.shape
    if rows == r and cols == c:
        return a
    return jnp.pad(a, ((0, rows - r), (0, cols - c)))


def mlp_kernel(x_ref, w1_ref, b1_ref, w2_ref, b2_ref, w3_ref, b3_ref, o_ref):
    # Fused 3-layer MLP on one batch tile. Weights (bf16) are resident in VMEM across
    # grid steps (constant index_maps). Matmuls: bf16 operands, f32 accumulation.
    # Bias adds + LeakyReLU in f32 (fast VPU path on all generations, incl. v5e).
    x = x_ref[...]  # f32 batch tile

    h1 = jnp.dot(x.astype(jnp.bfloat16), w1_ref[...],
                 preferred_element_type=jnp.float32) + b1_ref[...]
    h1 = _leaky_relu(h1)

    h2 = jnp.dot(h1.astype(jnp.bfloat16), w2_ref[...],
                 preferred_element_type=jnp.float32) + b2_ref[...]
    h2 = _leaky_relu(h2)

    # Dropout(p=0.0) is the identity — nothing to do.
    o_ref[...] = jnp.dot(h2.astype(jnp.bfloat16), w3_ref[...],
                         preferred_element_type=jnp.float32) + b3_ref[...]


def _vmem_caps():
    """Generation-aware VMEM capacity (v7x: 64 MiB, v5e/v6e: 128 MiB) + 25% headroom budget."""
    cap = 64 << 20
    try:
        info = pltpu.get_tpu_info()
        cap = int(getattr(info, "vmem_capacity_bytes", cap))
    except Exception:
        pass
    return cap, (cap * 3) // 4


def _choose_block_b(B, in_dim, h1_p, h2_p, out_p, budget):
    # Bytes resident in VMEM as a function of block_b:
    #   - x tile (f32) and out tile (f32): double-buffered by the Pallas pipeline
    #   - bf16 weights: constant index_maps (DMA'd once) but 2 buffers are still allocated
    #   - f32 intermediates h1/h2
    weight_bytes = 2 * 2 * (in_dim * h1_p + h1_p * h2_p + h2_p * out_p)  # bf16, 2 bufs
    bias_bytes = 2 * 4 * (h1_p + h2_p + out_p)
    per_row = (2 * 4 * in_dim          # x tile, double-buffered
               + 2 * 4 * out_p         # out tile, double-buffered
               + 4 * (h1_p + h2_p))    # intermediates
    avail = budget - weight_bytes - bias_bytes
    if avail <= per_row * LANE:
        max_bb = LANE
    else:
        max_bb = (avail // per_row) // LANE * LANE
    # Keep >= ~4 grid steps when B allows (megacore / v7x 2 TCs), never below one
    # 128-row MXU tile, and don't bother with tiles beyond 1024 rows.
    target = max(LANE, _round_up(-(-B // 4), LANE))
    return int(min(max_bb, target, 1024))


@functools.partial(jax.jit, static_argnames=("block_b",))
def mlp_forward(x, params, block_b=None):
    """Fused MLP forward. x: (B, in_dim) f32 -> (B, 2) f32."""
    w1, b1, w2, b2, w3, b3 = params
    B, in_dim = x.shape
    h1_dim, h2_dim, out_dim = w1.shape[1], w2.shape[1], w3.shape[1]

    h1_p = _round_up(h1_dim, LANE)   # 256 -> 256
    h2_p = _round_up(h2_dim, LANE)   # 64  -> 128 (zero pad inert through LeakyReLU)
    # Lane-dense (128-wide) output only when x reads dominate HBM traffic (module default
    # in_dim=10319 -> padding is <2% of bytes); otherwise keep the true 2-wide output to
    # avoid 64x write amplification.
    out_p = LANE if in_dim >= 16 * LANE else out_dim

    vmem_cap, vmem_budget = _vmem_caps()
    if block_b is None:
        block_b = _choose_block_b(B, in_dim, h1_p, h2_p, out_p, vmem_budget)

    # No K-axis padding of x. Pad batch only if it doesn't divide block_b (rows are
    # independent; the final [:B] slice drops padded rows).
    grid_b = pl.cdiv(B, block_b)
    B_p = grid_b * block_b
    x_p = _pad2d(x, B_p, in_dim)

    # Weights to bf16 once (halves DMA + VMEM footprint); biases stay f32.
    # Zero padding is inert: padded h2 columns get bias 0 -> LeakyReLU(0)=0 and the
    # matching W3 rows are zero, so padded lanes never affect real outputs.
    w1_p = w1.astype(jnp.bfloat16)                       # (in_dim, 256), no pad needed
    b1_p = _pad2d(b1.reshape(1, -1), 1, h1_p)
    w2_p = _pad2d(w2, h1_p, h2_p).astype(jnp.bfloat16)   # (256, 128)
    b2_p = _pad2d(b2.reshape(1, -1), 1, h2_p)
    w3_p = _pad2d(w3, h2_p, out_p).astype(jnp.bfloat16)  # (128, out_p)
    b3_p = _pad2d(b3.reshape(1, -1), 1, out_p)

    # VMEM budget: tiles + resident weights + intermediates, with headroom, capped below
    # the physical capacity of the current generation.
    est_bytes = (
        2 * 4 * block_b * in_dim
        + 2 * 4 * block_b * out_p
        + 2 * 2 * (in_dim * h1_p + h1_p * h2_p + h2_p * out_p)
        + 2 * 4 * (h1_p + h2_p + out_p)
        + 4 * block_b * (h1_p + h2_p)
    )
    vmem_limit = int(min(max(est_bytes + (4 << 20), 32 << 20), (vmem_cap * 9) // 10))

    out_padded = pl.pallas_call(
        mlp_kernel,
        out_shape=jax.ShapeDtypeStruct((B_p, out_p), jnp.float32),
        grid_spec=pltpu.PrefetchScalarGridSpec(
            num_scalar_prefetch=0,
            grid=(grid_b,),
            in_specs=[
                pl.BlockSpec((block_b, in_dim), lambda i: (i, 0)),  # x tile (full, unpadded K)
                pl.BlockSpec((in_dim, h1_p), lambda i: (0, 0)),     # W1 bf16 (resident)
                pl.BlockSpec((1, h1_p), lambda i: (0, 0)),          # b1
                pl.BlockSpec((h1_p, h2_p), lambda i: (0, 0)),       # W2 bf16
                pl.BlockSpec((1, h2_p), lambda i: (0, 0)),          # b2
                pl.BlockSpec((h2_p, out_p), lambda i: (0, 0)),      # W3 bf16
                pl.BlockSpec((1, out_p), lambda i: (0, 0)),         # b3
            ],
            out_specs=pl.BlockSpec((block_b, out_p), lambda i: (i, 0)),
        ),
        compiler_params=pltpu.CompilerParams(
            dimension_semantics=("parallel",),
            vmem_limit_bytes=vmem_limit,
        ),
    )(x_p, w1_p, b1_p, w2_p, b2_p, w3_p, b3_p)

    return out_padded[:B, :out_dim]


def init_params(key, in_dim):
    """Deterministic init mimicking PyTorch's default Linear init (uniform +/- 1/sqrt(fan_in)).

    Weights stored as (in_features, out_features) so the kernel computes y = x @ W + b.
    """
    dims = [(in_dim, 256), (256, 64), (64, 2)]
    params = []
    for (fan_in, fan_out) in dims:
        key, kw, kb = jax.random.split(key, 3)
        bound = 1.0 / jnp.sqrt(fan_in)
        w = jax.random.uniform(kw, (fan_in, fan_out), jnp.float32, -bound, bound)
        b = jax.random.uniform(kb, (1, fan_out), jnp.float32, -bound, bound)
        params += [w, b]
    return tuple(params)


def mlp_reference_f32(x, params):
    w1, b1, w2, b2, w3, b3 = params
    h = jax.nn.leaky_relu(x @ w1 + b1, NEG_SLOPE)
    h = jax.nn.leaky_relu(h @ w2 + b2, NEG_SLOPE)
    return h @ w3 + b3


def mlp_reference_bf16(x, params):
    # Same numerics recipe as the kernel: bf16 matmul operands, f32 accumulate,
    # f32 bias/activation.
    w1, b1, w2, b2, w3, b3 = params
    bf = jnp.bfloat16

    def mm(a, w):
        return jnp.dot(a.astype(bf), w.astype(bf), preferred_element_type=jnp.float32)

    h = jax.nn.leaky_relu(mm(x, w1) + b1, NEG_SLOPE)
    h = jax.nn.leaky_relu(mm(h, w2) + b2, NEG_SLOPE)
    return mm(h, w3) + b3


if __name__ == "__main__":
    # Small shapes consistent with the module's forward: (batch, in_dim) -> (batch, 2).
    # (The wrapper also supports the module default in_dim=10319 — ragged K, no x padding.)
    # B=256 with the adaptive block_b (=128 here) -> a 2-step parallel batch grid.
    B, IN_DIM = 256, 512

    key = jax.random.PRNGKey(0)
    kx, kp = jax.random.split(key)
    x = jax.random.normal(kx, (B, IN_DIM), jnp.float32)
    params = init_params(kp, IN_DIM)

    out = jax.block_until_ready(mlp_forward(x, params))
    assert out.shape == (B, 2), out.shape

    ref_bf16 = mlp_reference_bf16(x, params)   # matches kernel numerics
    ref_f32 = mlp_reference_f32(x, params)     # full-precision sanity check
    err_bf16 = float(jnp.max(jnp.abs(out - ref_bf16)))
    err_f32 = float(jnp.max(jnp.abs(out - ref_f32)))
    assert err_bf16 < 3e-3, err_bf16
    assert err_f32 < 3e-2, err_f32

    print("KERNEL_OK")
</pallas_src>

<mosaic_0001>
module attributes {stable_mosaic.version = 11 : i64} {
  func.func @mlp_kernel(%arg0: i32, %arg1: memref<128x512xf32, #tpu.memory_space<vmem>>, %arg2: memref<512x256xbf16, #tpu.memory_space<vmem>>, %arg3: memref<1x256xf32, #tpu.memory_space<vmem>>, %arg4: memref<256x128xbf16, #tpu.memory_space<vmem>>, %arg5: memref<1x128xf32, #tpu.memory_space<vmem>>, %arg6: memref<128x2xbf16, #tpu.memory_space<vmem>>, %arg7: memref<1x2xf32, #tpu.memory_space<vmem>>, %arg8: memref<128x2xf32, #tpu.memory_space<vmem>>) attributes {dimension_semantics = [#tpu.dimension_semantics<parallel>], iteration_bounds = array<i64: 2>, scalar_prefetch = 0 : i64, scratch_operands = 0 : i64, tpu.core_type = #tpu.core_type<tc>, window_params = [{transform_indices = @transform_0, window_bounds = array<i64: 128, 512>}, {pipeline_mode = #tpu.pipeline_mode<synchronous>, transform_indices = @transform_1, window_bounds = array<i64: 512, 256>}, {pipeline_mode = #tpu.pipeline_mode<synchronous>, transform_indices = @transform_2, window_bounds = array<i64: 1, 256>}, {pipeline_mode = #tpu.pipeline_mode<synchronous>, transform_indices = @transform_3, window_bounds = array<i64: 256, 128>}, {pipeline_mode = #tpu.pipeline_mode<synchronous>, transform_indices = @transform_4, window_bounds = array<i64: 1, 128>}, {pipeline_mode = #tpu.pipeline_mode<synchronous>, transform_indices = @transform_5, window_bounds = array<i64: 128, 2>}, {pipeline_mode = #tpu.pipeline_mode<synchronous>, transform_indices = @transform_6, window_bounds = array<i64: 1, 2>}, {transform_indices = @transform_7, window_bounds = array<i64: 128, 2>}]} {
    %c0 = arith.constant 0 : index
    %c0_0 = arith.constant 0 : index
    %0 = vector.load %arg1[%c0, %c0_0] : memref<128x512xf32, #tpu.memory_space<vmem>>, vector<128x512xf32>
    %1 = arith.truncf %0 : vector<128x512xf32> to vector<128x512xbf16>
    %c0_1 = arith.constant 0 : index
    %c0_2 = arith.constant 0 : index
    %2 = vector.load %arg2[%c0_1, %c0_2] : memref<512x256xbf16, #tpu.memory_space<vmem>>, vector<512x256xbf16>
    %cst = arith.constant dense<0.000000e+00> : vector<128x256xf32>
    %3 = tpu.matmul %1, %2, %cst {dimension_numbers = #tpu.dot_dimension_numbers<[1], [0], [0], [1], [0, 0, 1, 1], [], []>} : vector<128x512xbf16>, vector<512x256xbf16>, vector<128x256xf32> -> vector<128x256xf32>
    %c0_3 = arith.constant 0 : index
    %c0_4 = arith.constant 0 : index
    %4 = vector.load %arg3[%c0_3, %c0_4] : memref<1x256xf32, #tpu.memory_space<vmem>>, vector<1x256xf32>
    %5 = vector.broadcast %4 : vector<1x256xf32> to vector<128x256xf32>
    %6 = arith.addf %3, %5 : vector<128x256xf32>
    %cst_5 = arith.constant 0.000000e+00 : f32
    %7 = vector.broadcast %cst_5 : f32 to vector<128x256xf32>
    %8 = arith.cmpf ogt, %6, %7 : vector<128x256xf32>
    %cst_6 = arith.constant 0.00999999977 : f32
    %9 = vector.broadcast %cst_6 : f32 to vector<128x256xf32>
    %10 = arith.mulf %9, %6 : vector<128x256xf32>
    %11 = arith.select %8, %6, %10 : vector<128x256xi1>, vector<128x256xf32>
    %12 = arith.truncf %11 : vector<128x256xf32> to vector<128x256xbf16>
    %c0_7 = arith.constant 0 : index
    %c0_8 = arith.constant 0 : index
    %13 = vector.load %arg4[%c0_7, %c0_8] : memref<256x128xbf16, #tpu.memory_space<vmem>>, vector<256x128xbf16>
    %cst_9 = arith.constant dense<0.000000e+00> : vector<128x128xf32>
    %14 = tpu.matmul %12, %13, %cst_9 {dimension_numbers = #tpu.dot_dimension_numbers<[1], [0], [0], [1], [0, 0, 1, 1], [], []>} : vector<128x256xbf16>, vector<256x128xbf16>, vector<128x128xf32> -> vector<128x128xf32>
    %c0_10 = arith.constant 0 : index
    %c0_11 = arith.constant 0 : index
    %15 = vector.load %arg5[%c0_10, %c0_11] : memref<1x128xf32, #tpu.memory_space<vmem>>, vector<1x128xf32>
    %16 = vector.broadcast %15 : vector<1x128xf32> to vector<128x128xf32>
    %17 = arith.addf %14, %16 : vector<128x128xf32>
    %cst_12 = arith.constant 0.000000e+00 : f32
    %18 = vector.broadcast %cst_12 : f32 to vector<128x128xf32>
    %19 = arith.cmpf ogt, %17, %18 : vector<128x128xf32>
    %cst_13 = arith.constant 0.00999999977 : f32
    %20 = vector.broadcast %cst_13 : f32 to vector<128x128xf32>
    %21 = arith.mulf %20, %17 : vector<128x128xf32>
    %22 = arith.select %19, %17, %21 : vector<128x128xi1>, vector<128x128xf32>
    %23 = arith.truncf %22 : vector<128x128xf32> to vector<128x128xbf16>
    %c0_14 = arith.constant 0 : index
    %c0_15 = arith.constant 0 : index
    %24 = vector.load %arg6[%c0_14, %c0_15] : memref<128x2xbf16, #tpu.memory_space<vmem>>, vector<128x2xbf16>
    %cst_16 = arith.constant dense<0.000000e+00> : vector<128x2xf32>
    %25 = tpu.matmul %23, %24, %cst_16 {dimension_numbers = #tpu.dot_dimension_numbers<[1], [0], [0], [1], [0, 0, 1, 1], [], []>} : vector<128x128xbf16>, vector<128x2xbf16>, vector<128x2xf32> -> vector<128x2xf32>
    %c0_17 = arith.constant 0 : index
    %c0_18 = arith.constant 0 : index
    %26 = vector.load %arg7[%c0_17, %c0_18] : memref<1x2xf32, #tpu.memory_space<vmem>>, vector<1x2xf32>
    %27 = vector.broadcast %26 : vector<1x2xf32> to vector<128x2xf32>
    %28 = arith.addf %25, %27 : vector<128x2xf32>
    %c0_19 = arith.constant 0 : index
    %c0_20 = arith.constant 0 : index
    %29 = vector.load %arg8[%c0_19, %c0_20] : memref<128x2xf32, #tpu.memory_space<vmem>>, vector<128x2xf32>
    tpu.vector_store %arg8[%c0_19, %c0_20], %28 {strides = array<i32>} : memref<128x2xf32, #tpu.memory_space<vmem>>, vector<128x2xf32>,
    return
  }
  func.func @transform_0(%arg0: i32) -> (i32, i32) {
    %c0_i32 = arith.constant 0 : i32
    %c0_i32_0 = arith.constant 0 : i32
    return %arg0, %c0_i32 : i32, i32
  }
  func.func @transform_1(%arg0: i32) -> (i32, i32) {
    %c0_i32 = arith.constant 0 : i32
    %c0_i32_0 = arith.constant 0 : i32
    %c0_i32_1 = arith.constant 0 : i32
    return %c0_i32, %c0_i32_0 : i32, i32
  }
  func.func @transform_2(%arg0: i32) -> (i32, i32) {
    %c0_i32 = arith.constant 0 : i32
    %c0_i32_0 = arith.constant 0 : i32
    %c0_i32_1 = arith.constant 0 : i32
    return %c0_i32, %c0_i32_0 : i32, i32
  }
  func.func @transform_3(%arg0: i32) -> (i32, i32) {
    %c0_i32 = arith.constant 0 : i32
    %c0_i32_0 = arith.constant 0 : i32
    %c0_i32_1 = arith.constant 0 : i32
    return %c0_i32, %c0_i32_0 : i32, i32
  }
  func.func @transform_4(%arg0: i32) -> (i32, i32) {
    %c0_i32 = arith.constant 0 : i32
    %c0_i32_0 = arith.constant 0 : i32
    %c0_i32_1 = arith.constant 0 : i32
    return %c0_i32, %c0_i32_0 : i32, i32
  }
  func.func @transform_5(%arg0: i32) -> (i32, i32) {
    %c0_i32 = arith.constant 0 : i32
    %c0_i32_0 = arith.constant 0 : i32
    %c0_i32_1 = arith.constant 0 : i32
    return %c0_i32, %c0_i32_0 : i32, i32
  }
  func.func @transform_6(%arg0: i32) -> (i32, i32) {
    %c0_i32 = arith.constant 0 : i32
    %c0_i32_0 = arith.constant 0 : i32
    %c0_i32_1 = arith.constant 0 : i32
    return %c0_i32, %c0_i32_0 : i32, i32
  }
  func.func @transform_7(%arg0: i32) -> (i32, i32) {
    %c0_i32 = arith.constant 0 : i32
    %c0_i32_0 = arith.constant 0 : i32
    return %arg0, %c0_i32 : i32, i32
  }
}

</mosaic_0001>

<bundles_post_ra>
// kernel: mlp_forward.1
= control target key start
LH: loop header
LB: loop body
LE: loop exit
PB: predicated region body
PF: predicated region fallthrough
CT: control target
= control target key end

     0   :  { %s2036_s24 = smov 0   ;;  %s2491_s0 = inlined_call_operand.vmem [shape: f32[256,512], index: 0, kind: input, shape index: {}]   ;;  %s2492_s1 = inlined_call_operand.vmem [shape: bf16[512,256], index: 1, kind: input, shape index: {}]   ;;  %s2493_s2 = inlined_call_operand.vmem [shape: f32[1,256], index: 2, kind: input, shape index: {}]   ;;  %s2494_s3 = inlined_call_operand.vmem [shape: bf16[256,128], index: 3, kind: input, shape index: {}]   ;;  %s2495_s4 = inlined_call_operand.vmem [shape: f32[1,128], index: 4, kind: input, shape index: {}]   ;;  %s2496_s5 = inlined_call_operand.vmem [shape: bf16[128,2], index: 5, kind: input, shape index: {}]   ;;  %s2497_s6 = inlined_call_operand.vmem [shape: f32[1,2], index: 6, kind: input, shape index: {}]   ;;  %s2498_s7 = inlined_call_operand.vmem [shape: f32[256,2], index: 7, kind: output, shape index: {}]  }
   0x1 LB: > { %s1645_s25 = sadd.s32 4294967295, %s1994_s24   ;;  %p1649_p0 = scmp.ge.s32.totalorder %s1994_s24, 1  ;;  %s1994_s24 = sphi %s2036_s24, %s17_s24  }
   0x2   : > { %p239_p1 = scmp.lt.s32.totalorder %s1994_s24, 3 }
   0x4   : > { %p240_p2 = pnand %p1649_p0, %p239_p1 }
   0x5   : > { %s1650_s21 = sshll.u32 (!%p240_p2), %s1645_s25, 4 }
   0x6   : > { %243 = sbr.rel (%p240_p2) target bundleno = 751 (0x2ef), region = 48  ;;  %p273_p3 = scmp.lt.s32.totalorder (!%p240_p2), %s1650_s21, 31 }
   0xb   : > { %v1868_v0 = vld [vmem:[%s2492_s1 + $0x74] ss:$8 sps:$4 sm:$0xff]   ;;  %v1872_v2 = vld [vmem:[%s2492_s1 + $0x70] ss:$8 sps:$4 sm:$0xff]   ;;  %v1874_v4 = vld [vmem:[%s2492_s1 + $0x64] ss:$8 sps:$4 sm:$0xff]  }
   0xc   : > { %v1870_v1 = vld [vmem:[%s2492_s1 + $0x174] ss:$8 sps:$4 sm:$0xff]   ;;  %778 = vmatprep.subr.bf16.mxu0 %v1868_v0  ;;  %v1873_v3 = vld [vmem:[%s2492_s1 + $0x170] ss:$8 sps:$4 sm:$0xff]   ;;  %v1876_v5 = vld [vmem:[%s2492_s1 + $0x164] ss:$8 sps:$4 sm:$0xff]  }
   0xd   : > { %891 = vmatprep.subr.bf16.mxu1 %v1870_v1  ;;  %779 = vmatpush1.bf16.msra.mxu0 %v1872_v2  ;;  %v1878_v6 = vld [vmem:[%s2492_s1 + $0x60] ss:$8 sps:$4 sm:$0xff]   ;;  %v1880_v8 = vld [vmem:[%s2492_s1 + $0x54] ss:$8 sps:$4 sm:$0xff]   ;;  %v1884_v10 = vld [vmem:[%s2492_s1 + $0x50] ss:$8 sps:$4 sm:$0xff]  }
   0xe   : > { %892 = vmatpush1.bf16.msra.mxu1 %v1873_v3  ;;  %780 = vmatprep.subr.bf16.mxu0 %v1874_v4  ;;  %v1879_v7 = vld [vmem:[%s2492_s1 + $0x160] ss:$8 sps:$4 sm:$0xff]   ;;  %v1882_v9 = vld [vmem:[%s2492_s1 + $0x154] ss:$8 sps:$4 sm:$0xff]   ;;  %v1885_v11 = vld [vmem:[%s2492_s1 + $0x150] ss:$8 sps:$4 sm:$0xff]  }
   0xf   : > { %893 = vmatprep.subr.bf16.mxu1 %v1876_v5  ;;  %v1886_v12 = vld [vmem:[%s2492_s1 + $0x44] ss:$8 sps:$4 sm:$0xff]   ;;  %v1890_v14 = vld [vmem:[%s2492_s1 + $0x40] ss:$8 sps:$4 sm:$0xff]   ;;  %v1892_v16 = vld [vmem:[%s2492_s1 + $0x34] ss:$8 sps:$4 sm:$0xff]  }
  0x10   : > { %v1888_v13 = vld [vmem:[%s2492_s1 + $0x144] ss:$8 sps:$4 sm:$0xff]   ;;  %v1891_v15 = vld [vmem:[%s2492_s1 + $0x140] ss:$8 sps:$4 sm:$0xff]   ;;  %v1894_v17 = vld [vmem:[%s2492_s1 + $0x134] ss:$8 sps:$4 sm:$0xff]  }
  0x11   : > { %781 = vmatpush1.bf16.msra.mxu0 %v1878_v6  ;;  %v1896_v18 = vld [vmem:[%s2492_s1 + $0x30] ss:$8 sps:$4 sm:$0xff]   ;;  %v1898_v20 = vld [vmem:[%s2492_s1 + $0x24] ss:$8 sps:$4 sm:$0xff]   ;;  %v1902_v22 = vld [vmem:[%s2492_s1 + $0x20] ss:$8 sps:$4 sm:$0xff]  }
  0x12   : > { %894 = vmatpush1.bf16.msra.mxu1 %v1879_v7  ;;  %782 = vmatprep.subr.bf16.mxu0 %v1880_v8  ;;  %v1897_v19 = vld [vmem:[%s2492_s1 + $0x130] ss:$8 sps:$4 sm:$0xff]   ;;  %v1900_v21 = vld [vmem:[%s2492_s1 + $0x124] ss:$8 sps:$4 sm:$0xff]   ;;  %v1903_v23 = vld [vmem:[%s2492_s1 + $0x120] ss:$8 sps:$4 sm:$0xff]  }
  0x13   : > { %895 = vmatprep.subr.bf16.mxu1 %v1882_v9  ;;  %v1904_v24 = vld [vmem:[%s2492_s1 + $0x14] ss:$8 sps:$4 sm:$0xff]   ;;  %v1908_v26 = vld [vmem:[%s2492_s1 + $0x10] ss:$8 sps:$4 sm:$0xff]   ;;  %v1910_v28 = vld [vmem:[%s2492_s1 + $0x4] ss:$8 sps:$4 sm:$0xff]  }
  0x14   : > { %v1906_v25 = vld [vmem:[%s2492_s1 + $0x114] ss:$8 sps:$4 sm:$0xff]   ;;  %v1909_v27 = vld [vmem:[%s2492_s1 + $0x110] ss:$8 sps:$4 sm:$0xff]   ;;  %v1912_v29 = vld [vmem:[%s2492_s1 + $0x104] ss:$8 sps:$4 sm:$0xff]  }
  0x15   : > { %783 = vmatpush1.bf16.msra.mxu0 %v1884_v10  ;;  %v1914_v30 = vld [vmem:[%s2492_s1] ss:$8 sps:$4 sm:$0xff]   ;;  %v1916_v32 = vld [vmem:[%s2492_s1 + $0xf4] ss:$8 sps:$4 sm:$0xff]   ;;  %v1920_v34 = vld [vmem:[%s2492_s1 + $0xf0] ss:$8 sps:$4 sm:$0xff]  }
  0x16   : > { %896 = vmatpush1.bf16.msra.mxu1 %v1885_v11  ;;  %784 = vmatprep.subr.bf16.mxu0 %v1886_v12  ;;  %v1915_v31 = vld [vmem:[%s2492_s1 + $0x100] ss:$8 sps:$4 sm:$0xff]   ;;  %v1918_v33 = vld [vmem:[%s2492_s1 + $0x1f4] ss:$8 sps:$4 sm:$0xff]   ;;  %v1921_v35 = vld [vmem:[%s2492_s1 + $0x1f0] ss:$8 sps:$4 sm:$0xff]  }
  0x17   : > { %897 = vmatprep.subr.bf16.mxu1 %v1888_v13  ;;  %v1922_v36 = vld [vmem:[%s2492_s1 + $0xe4] ss:$8 sps:$4 sm:$0xff]   ;;  %s2500_s21 = smov (!%p273_p3, %s1650_s21), 31  ;;  %v1926_v38 = vld [vmem:[%s2492_s1 + $0xe0] ss:$8 sps:$4 sm:$0xff]  }
  0x18   : > { %v1924_v37 = vld [vmem:[%s2492_s1 + $0x1e4] ss:$8 sps:$4 sm:$0xff]   ;;  %v1927_v39 = vld [vmem:[%s2492_s1 + $0x1e0] ss:$8 sps:$4 sm:$0xff]   ;;  %v1928_v40 = vld [vmem:[%s2492_s1 + $0xd4] ss:$8 sps:$4 sm:$0xff]  }
  0x19   : > { %785 = vmatpush1.bf16.msra.mxu0 %v1890_v14  ;;  %s1747_s23 = sshll.u32 %s2500_s21, 5  ;;  %v1930_v41 = vld [vmem:[%s2492_s1 + $0x1d4] ss:$8 sps:$4 sm:$0xff]   ;;  %v1932_v42 = vld [vmem:[%s2492_s1 + $0xd0] ss:$8 sps:$4 sm:$0xff]  }
  0x1a   : > { %898 = vmatpush1.bf16.msra.mxu1 %v1891_v15  ;;  %786 = vmatprep.subr.bf16.mxu0 %v1892_v16  ;;  %v1933_v43 = vld [vmem:[%s2492_s1 + $0x1d0] ss:$8 sps:$4 sm:$0xff]   ;;  %s2184_s10 = scalar_lea.vmem %s2491_s0, %s1747_s23  ;;  %v1934_v44 = vld [vmem:[%s2492_s1 + $0xc4] ss:$8 sps:$4 sm:$0xff]   ;;  %v1938_v50 = vld [vmem:[%s2492_s1 + $0xc0] ss:$8 sps:$4 sm:$0xff]  }
  0x1b   : > { %899 = vmatprep.subr.bf16.mxu1 %v1894_v17  ;;  %v1936_v45 = vld [vmem:[%s2492_s1 + $0x1c4] ss:$8 sps:$4 sm:$0xff]   ;;  %v289_v48 = vld [vmem:[%s2184_s10 + $0x18] sm:$0xff]  ;;  %v1939_v51 = vld [vmem:[%s2492_s1 + $0x1c0] ss:$8 sps:$4 sm:$0xff]  }
  0x1c   : > { %v287_v46 = vld [vmem:[%s2184_s10 + $0x8] sm:$0xff]  ;;  %v293_v49 = vld [vmem:[%s2184_s10 + $0x38] sm:$0xff]  ;;  %v286_v6 = vld [vmem:[%s2184_s10] sm:$0xff] }
  0x1d   : > { %787 = vmatpush1.bf16.msra.mxu0 %v1896_v18  ;;  %v291_v47 = vld [vmem:[%s2184_s10 + $0x28] sm:$0xff]  ;;  %v353_v53 = vpack.c.bf16 %v293_v49, %v289_v48  ;;  %v1940_v54 = vld [vmem:[%s2492_s1 + $0xb4] ss:$8 sps:$4 sm:$0xff]   ;;  %v1944_v56 = vld [vmem:[%s2492_s1 + $0xb0] ss:$8 sps:$4 sm:$0xff]  }
  0x1e   : > { %900 = vmatpush1.bf16.msra.mxu1 %v1897_v19  ;;  %788 = vmatprep.subr.bf16.mxu0 %v1898_v20  ;;  %v351_v52 = vpack.c.bf16 %v291_v47, %v287_v46  ;;  %v1942_v55 = vld [vmem:[%s2492_s1 + $0x1b4] ss:$8 sps:$4 sm:$0xff]   ;;  %v1945_v57 = vld [vmem:[%s2492_s1 + $0x1b0] ss:$8 sps:$4 sm:$0xff]   ;;  %v1946_v58 = vld [vmem:[%s2492_s1 + $0xa4] ss:$8 sps:$4 sm:$0xff]  }
  0x1f   : > { %901 = vmatprep.subr.bf16.mxu1 %v1900_v21  ;;  %923 = vmatprep.mubr.bf16.mxu1 %v353_v53  ;;  %v1948_v59 = vld [vmem:[%s2492_s1 + $0x1a4] ss:$8 sps:$4 sm:$0xff]   ;;  %v1950_v60 = vld [vmem:[%s2492_s1 + $0xa0] ss:$8 sps:$4 sm:$0xff]   ;;  %v1952_v62 = vld [vmem:[%s2492_s1 + $0x94] ss:$8 sps:$4 sm:$0xff]  }
  0x20   : > { %810 = vmatprep.mubr.bf16.mxu0 %v351_v52  ;;  %v1951_v61 = vld [vmem:[%s2492_s1 + $0x1a0] ss:$8 sps:$4 sm:$0xff]   ;;  %v1954_v63 = vld [vmem:[%s2492_s1 + $0x194] ss:$8 sps:$4 sm:$0xff]   ;;  %v1956_v0 = vld [vmem:[%s2492_s1 + $0x90] ss:$8 sps:$4 sm:$0xff]  }
  0x21   : > { %789 = vmatpush1.bf16.msra.mxu0 %v1902_v22  ;;  %v1957_v1 = vld [vmem:[%s2492_s1 + $0x190] ss:$8 sps:$4 sm:$0xff]   ;;  %v1958_v2 = vld [vmem:[%s2492_s1 + $0x84] ss:$8 sps:$4 sm:$0xff]   ;;  %v1962_v4 = vld [vmem:[%s2492_s1 + $0x80] ss:$8 sps:$4 sm:$0xff]  }
  0x22   : > { %902 = vmatpush1.bf16.msra.mxu1 %v1903_v23  ;;  %790 = vmatprep.subr.bf16.mxu0 %v1904_v24  ;;  %v1960_v3 = vld [vmem:[%s2492_s1 + $0x184] ss:$8 sps:$4 sm:$0xff]   ;;  %v1963_v5 = vld [vmem:[%s2492_s1 + $0x180] ss:$8 sps:$4 sm:$0xff]   ;;  %v288_v8 = vld [vmem:[%s2184_s10 + $0x10] sm:$0xff] }
  0x23   : > { %903 = vmatprep.subr.bf16.mxu1 %v1906_v25  ;;  %v290_v7 = vld [vmem:[%s2184_s10 + $0x20] sm:$0xff]  ;;  %v292_v9 = vld [vmem:[%s2184_s10 + $0x30] sm:$0xff]  ;;  %v295_v10 = vld [vmem:[%s2184_s10 + $0x48] sm:$0xff] }
  0x24   : > { %v299_v11 = vld [vmem:[%s2184_s10 + $0x68] sm:$0xff]  ;;  %v297_v12 = vld [vmem:[%s2184_s10 + $0x58] sm:$0xff]  ;;  %v350_v14 = vpack.c.bf16 %v290_v7, %v286_v6  ;;  %v352_v15 = vpack.c.bf16 %v292_v9, %v288_v8  ;;  %v294_v20 = vld [vmem:[%s2184_s10 + $0x40] sm:$0xff] }
  0x25   : > { %791 = vmatpush1.bf16.msra.mxu0 %v1908_v26  ;;  %v301_v13 = vld [vmem:[%s2184_s10 + $0x78] sm:$0xff]  ;;  %v355_v16 = vpack.c.bf16 %v299_v11, %v295_v10  ;;  %v298_v21 = vld [vmem:[%s2184_s10 + $0x60] sm:$0xff]  ;;  %v296_v22 = vld [vmem:[%s2184_s10 + $0x50] sm:$0xff] }
  0x26   : > { %904 = vmatpush1.bf16.msra.mxu1 %v1909_v27  ;;  %792 = vmatprep.subr.bf16.mxu0 %v1910_v28  ;;  %v357_v17 = vpack.c.bf16 %v301_v13, %v297_v12  ;;  %v1964_v18 = vld [vmem:[%s2494_s3 + $0x78] sm:$0xff]   ;;  %v300_v23 = vld [vmem:[%s2184_s10 + $0x70] sm:$0xff]  ;;  %v303_v25 = vld [vmem:[%s2184_s10 + $0x88] sm:$0xff] }
  0x27   : > { %905 = vmatprep.subr.bf16.mxu1 %v1912_v29  ;;  %v1965_v19 = vld [vmem:[%s2494_s3 + $0x38] sm:$0xff]   ;;  %v1966_v24 = vld [vmem:[%s2494_s3 + $0x70] sm:$0xff]   ;;  %v307_v26 = vld [vmem:[%s2184_s10 + $0xa8] sm:$0xff] }
  0x28   : > { %v305_v27 = vld [vmem:[%s2184_s10 + $0x98] sm:$0xff]  ;;  %v1967_v29 = vld [vmem:[%s2494_s3 + $0x30] sm:$0xff]   ;;  %v310_v53 = vld [vmem:[%s2184_s10 + $0xc0] sm:$0xff] }
  0x29   : > { %793 = vmatpush1.bf16.msra.mxu0 %v1914_v30  ;;  %v309_v28 = vld [vmem:[%s2184_s10 + $0xb8] sm:$0xff]  ;;  %v1968_v30 = vld [vmem:[%s2494_s3 + $0x68] sm:$0xff]   ;;  %v1974_v52 = vld [vmem:[%s2494_s3 + $0x50] sm:$0xff]  }
  0x2a   : > { %906 = vmatpush1.bf16.msra.mxu1 %v1915_v31  ;;  %794 = vmatprep.subr.bf16.mxu0 %v1916_v32  ;;  %v354_v31 = vpack.c.bf16 %v298_v21, %v294_v20  ;;  %v356_v32 = vpack.c.bf16 %v300_v23, %v296_v22  ;;  %v1972_v46 = vld [vmem:[%s2494_s3 + $0x58] sm:$0xff]   ;;  %v327_v6 = vld [vmem:[%s2184_s10 + $0x148] sm:$0xff] }
  0x2b   : > { %907 = vmatprep.subr.bf16.mxu1 %v1918_v33  ;;  %v359_v33 = vpack.c.bf16 %v307_v26, %v303_v25  ;;  %v1973_v49 = vld [vmem:[%s2494_s3 + $0x18] sm:$0xff]   ;;  %v331_v7 = vld [vmem:[%s2184_s10 + $0x168] sm:$0xff]  ;;  %v334_v26 = vld [vmem:[%s2184_s10 + $0x180] sm:$0xff] }
  0x2c   : > { %v329_v8 = vld [vmem:[%s2184_s10 + $0x158] sm:$0xff]  ;;  %v371_v12 = vpack.c.bf16 %v331_v7, %v327_v6 }
  0x2d   : > { %795 = vmatpush2.bf16.msra.mxu0 %v1920_v34  ;;  %v361_v34 = vpack.c.bf16 %v309_v28, %v305_v27  ;;  %v333_v9 = vld [vmem:[%s2184_s10 + $0x178] sm:$0xff]  ;;  %v338_v27 = vld [vmem:[%s2184_s10 + $0x1a0] sm:$0xff]  ;;  %v336_v28 = vld [vmem:[%s2184_s10 + $0x190] sm:$0xff] }
  0x2e   : > { %908 = vmatpush2.bf16.msra.mxu1 %v1921_v35  ;;  %796 = vmatprep.subr.bf16.mxu0 %v1922_v36  ;;  %v1969_v35 = vld [vmem:[%s2494_s3 + $0x28] sm:$0xff]   ;;  %v302_v36 = vld [vmem:[%s2184_s10 + $0x80] sm:$0xff]  ;;  %v373_v13 = vpack.c.bf16 %v333_v9, %v329_v8  ;;  %v337_v20 = vld [vmem:[%s2184_s10 + $0x198] sm:$0xff] }
  0x2f   : > { %909 = vmatprep.subr.bf16.mxu1 %v1924_v37  ;;  %v306_v37 = vld [vmem:[%s2184_s10 + $0xa0] sm:$0xff]  ;;  %v341_v21 = vld [vmem:[%s2184_s10 + $0x1b8] sm:$0xff] }
  0x30   : > { %v358_v47 = vpack.c.bf16 %v306_v37, %v302_v36  ;;  %v377_v25 = vpack.c.bf16 %v341_v21, %v337_v20 }
  0x31   : > { %797 = vmatpush2.bf16.msra.mxu0 %v1926_v38  ;;  %v304_v38 = vld [vmem:[%s2184_s10 + $0x90] sm:$0xff] }
  0x32   : > { %910 = vmatpush2.bf16.msra.mxu1 %v1927_v39  ;;  %798 = vmatprep.subr.bf16.mxu0 %v1928_v40  ;;  %v308_v39 = vld [vmem:[%s2184_s10 + $0xb0] sm:$0xff]  ;;  %v1970_v40 = vld [vmem:[%s2494_s3 + $0x60] sm:$0xff]  }
  0x33   : > { %911 = vmatprep.subr.bf16.mxu1 %v1930_v41  ;;  %v311_v41 = vld [vmem:[%s2184_s10 + $0xc8] sm:$0xff]  ;;  %v360_v48 = vpack.c.bf16 %v308_v39, %v304_v38  ;;  %v342_v38 = vld [vmem:[%s2184_s10 + $0x1c0] sm:$0xff] }
  0x34   : > { %v346_v39 = vld [vmem:[%s2184_s10 + $0x1e0] sm:$0xff] }
  0x35   : > { %799 = vmatpush2.bf16.msra.mxu0 %v1932_v42  ;;  %v315_v42 = vld [vmem:[%s2184_s10 + $0xe8] sm:$0xff] }
  0x36   : > { %912 = vmatpush2.bf16.msra.mxu1 %v1933_v43  ;;  %800 = vmatprep.subr.bf16.mxu0 %v1934_v44  ;;  %v313_v43 = vld [vmem:[%s2184_s10 + $0xd8] sm:$0xff] }
  0x37   : > { %913 = vmatprep.subr.bf16.mxu1 %v1936_v45  ;;  %v317_v44 = vld [vmem:[%s2184_s10 + $0xf8] sm:$0xff]  ;;  %v1971_v45 = vld [vmem:[%s2494_s3 + $0x20] sm:$0xff]  }
  0x39   : > { %801 = vmatpush2.bf16.msra.mxu0 %v1938_v50  ;;  %v363_v50 = vpack.c.bf16 %v315_v42, %v311_v41  ;;  %v348_v41 = vld [vmem:[%s2184_s10 + $0x1f0] sm:$0xff]  ;;  %v378_v42 = vpack.c.bf16 %v346_v39, %v342_v38 }
  0x3a   : > { %914 = vmatpush2.bf16.msra.mxu1 %v1939_v51  ;;  %802 = vmatprep.subr.bf16.mxu0 %v1940_v54  ;;  %v365_v51 = vpack.c.bf16 %v317_v44, %v313_v43  ;;  %v314_v54 = vld [vmem:[%s2184_s10 + $0xe0] sm:$0xff]  ;;  %v1976_v44 = vld [vmem:[%s2494_s3 + $0x48] sm:$0xff]  }
  0x3b   : > { %915 = vmatprep.subr.bf16.mxu1 %v1942_v55  ;;  %v312_v55 = vld [vmem:[%s2184_s10 + $0xd0] sm:$0xff] }
  0x3d   : > { %803 = vmatpush2.bf16.msra.mxu0 %v1944_v56  ;;  %v316_v56 = vld [vmem:[%s2184_s10 + $0xf0] sm:$0xff] }
  0x3e   : > { %916 = vmatpush2.bf16.msra.mxu1 %v1945_v57  ;;  %804 = vmatprep.subr.bf16.mxu0 %v1946_v58  ;;  %v319_v57 = vld [vmem:[%s2184_s10 + $0x108] sm:$0xff] }
  0x3f   : > { %917 = vmatprep.subr.bf16.mxu1 %v1948_v59  ;;  %v323_v58 = vld [vmem:[%s2184_s10 + $0x128] sm:$0xff]  ;;  %v321_v59 = vld [vmem:[%s2184_s10 + $0x118] sm:$0xff] }
  0x41   : > { %805 = vmatpush2.bf16.msra.mxu0 %v1950_v60  ;;  %v325_v60 = vld [vmem:[%s2184_s10 + $0x138] sm:$0xff] }
  0x42   : > { %918 = vmatpush2.bf16.msra.mxu1 %v1951_v61  ;;  %806 = vmatprep.subr.bf16.mxu0 %v1952_v62  ;;  %v1975_v61 = vld [vmem:[%s2494_s3 + $0x10] sm:$0xff]   ;;  %v362_v62 = vpack.c.bf16 %v314_v54, %v310_v53 }
  0x43   : > { %919 = vmatprep.subr.bf16.mxu1 %v1954_v63  ;;  %v364_v63 = vpack.c.bf16 %v316_v56, %v312_v55  ;;  %v446_v55 = vld [vmem:[%s2493_s2] sm:$0x3] }
  0x45   : > { %807 = vmatpush2.bf16.msra.mxu0 %v1956_v0  ;;  %v367_v0 = vpack.c.bf16 %v323_v58, %v319_v57 }
  0x46   : > { %920 = vmatpush2.bf16.msra.mxu1 %v1957_v1  ;;  %808 = vmatprep.subr.bf16.mxu0 %v1958_v2  ;;  %v369_v1 = vpack.c.bf16 %v325_v60, %v321_v59  ;;  %v318_v2 = vld [vmem:[%s2184_s10 + $0x100] sm:$0xff] }
  0x47   : > { %921 = vmatprep.subr.bf16.mxu1 %v1960_v3  ;;  %v322_v3 = vld [vmem:[%s2184_s10 + $0x120] sm:$0xff] }
  0x48   : > { %v366_v10 = vpack.c.bf16 %v322_v3, %v318_v2 }
  0x49   : > { %809 = vmatpush2.bf16.msra.mxu0 %v1962_v4  ;;  %v320_v4 = vld [vmem:[%s2184_s10 + $0x110] sm:$0xff] }
  0x4a   : > { %922 = vmatpush2.bf16.msra.mxu1 %v1963_v5  ;;  %1748 = vmatprep.subr.bf16.mxu0 %v1964_v18  ;;  %v324_v5 = vld [vmem:[%s2184_s10 + $0x130] sm:$0xff]  ;;  %v335_v18 = vld [vmem:[%s2184_s10 + $0x188] sm:$0xff] }
  0x4b   : > { %v368_v11 = vpack.c.bf16 %v324_v5, %v320_v4 }
  0x4c   : > { %811 = vmatmul.mubr.bf16.vlgmr.msra.gmra.mxu0 %v350_v14  ;;  %v326_v14 = vld [vmem:[%s2184_s10 + $0x140] sm:$0xff] }
  0x4d   : > { %924 = vmatmul.mubr.bf16.vlgmr.msra.gmra.mxu1 %v352_v15  ;;  %820 = vmatprep.mubr.bf16.mxu0 %v355_v16  ;;  %v330_v15 = vld [vmem:[%s2184_s10 + $0x160] sm:$0xff]  ;;  %v328_v16 = vld [vmem:[%s2184_s10 + $0x150] sm:$0xff] }
  0x4e   : > { %933 = vmatprep.mubr.bf16.mxu1 %v357_v17  ;;  %1749 = vmatpush3.bf16.msra.mxu0 %v1965_v19  ;;  %v332_v17 = vld [vmem:[%s2184_s10 + $0x170] sm:$0xff]  ;;  %v339_v19 = vld [vmem:[%s2184_s10 + $0x1a8] sm:$0xff]  ;;  %v370_v22 = vpack.c.bf16 %v330_v15, %v326_v14 }
  0x4f   : > { %1750 = vmatprep.subr.bf16.mxu0 %v1966_v24  ;;  %v372_v23 = vpack.c.bf16 %v332_v17, %v328_v16  ;;  %v375_v24 = vpack.c.bf16 %v339_v19, %v335_v18 }
  0x52   : > { %1751 = vmatpush3.bf16.msra.mxu0 %v1967_v29  ;;  %v340_v29 = vld [vmem:[%s2184_s10 + $0x1b0] sm:$0xff] }
  0x53   : > { %1752 = vmatprep.subr.bf16.mxu0 %v1968_v30  ;;  %v343_v30 = vld [vmem:[%s2184_s10 + $0x1c8] sm:$0xff] }
  0x54   : > { %821 = vmatmul.mubr.bf16.gmra.mxu0 %v354_v31  ;;  %v347_v31 = vld [vmem:[%s2184_s10 + $0x1e8] sm:$0xff] }
  0x55   : > { %934 = vmatmul.mubr.bf16.gmra.mxu1 %v356_v32  ;;  %830 = vmatprep.mubr.bf16.mxu0 %v359_v33  ;;  %v345_v32 = vld [vmem:[%s2184_s10 + $0x1d8] sm:$0xff]  ;;  %v379_v36 = vpack.c.bf16 %v347_v31, %v343_v30 }
  0x56   : > { %943 = vmatprep.mubr.bf16.mxu1 %v361_v34  ;;  %1753 = vmatpush3.bf16.msra.mxu0 %v1969_v35  ;;  %v349_v33 = vld [vmem:[%s2184_s10 + $0x1f8] sm:$0xff]  ;;  %v374_v34 = vpack.c.bf16 %v338_v27, %v334_v26  ;;  %v376_v35 = vpack.c.bf16 %v340_v29, %v336_v28 }
  0x57   : > { %1754 = vmatprep.subr.bf16.mxu0 %v1970_v40  ;;  %v381_v37 = vpack.c.bf16 %v349_v33, %v345_v32  ;;  %v344_v40 = vld [vmem:[%s2184_s10 + $0x1d0] sm:$0xff]  ;;  %s1654_s10 = sshll.u32 %s2500_s21, 3 }
  0x58   : > { %v380_v43 = vpack.c.bf16 %v348_v41, %v344_v40  ;;  %s2454_s29 = scalar_lea.vmem %s2498_s7, %s1654_s10 }
  0x5a   : > { %1755 = vmatpush3.bf16.msra.mxu0 %v1971_v45  ;;  %v1977_v45 = vld [vmem:[%s2494_s3 + $0x8] sm:$0xff]  }
  0x5b   : > { %1756 = vmatprep.subr.bf16.mxu0 %v1972_v46  ;;  %v1978_v46 = vld [vmem:[%s2494_s3 + $0x40] sm:$0xff]  }
  0x5c   : > { %831 = vmatmul.mubr.bf16.gmra.mxu0 %v358_v47  ;;  %v1979_v47 = vld [vmem:[%s2494_s3] sm:$0xff]  }
  0x5d   : > { %944 = vmatmul.mubr.bf16.gmra.mxu1 %v360_v48  ;;  %840 = vmatprep.mubr.bf16.mxu0 %v363_v50  ;;  %v1980_v48 = vld [vmem:[%s2496_s5 + $0x38] sm:$0xff]   ;;  %v1982_v50 = vld [vmem:[%s2496_s5 + $0x28] sm:$0xff]  }
  0x5e   : > { %953 = vmatprep.mubr.bf16.mxu1 %v365_v51  ;;  %1757 = vmatpush3.bf16.msra.mxu0 %v1973_v49  ;;  %v1981_v49 = vld [vmem:[%s2496_s5 + $0x30] sm:$0xff]   ;;  %v448_v51 = vlaneseq }
  0x5f   : > { %1758 = vmatprep.subr.bf16.mxu0 %v1974_v52  ;;  %1828 = vmatprep.subr.bf16.mxu1 %v1980_v48 }
  0x60   : > { %1829 = vmatpush3.bf16.msra.mxu1 %v1980_v48  ;;  %v449_v52 = vshrl.u32 %v448_v51, 7 }
  0x61   : > { %1830 = vmatprep.subr.bf16.mxu1 %v1981_v49 }
  0x62   : > { %1759 = vmatpush3.bf16.msra.mxu0 %v1975_v61  ;;  %v450_v53 = vsub.s32 0, %v449_v52  ;;  %v454_v54 = vsub.s32 1, %v449_v52 }
  0x63   : > { %1760 = vmatprep.subr.bf16.mxu0 %v1976_v44 }
  0x64   : > { %841 = vmatmul.mubr.bf16.gmra.mxu0 %v362_v62  ;;  %1831 = vmatpush3.bf16.msra.mxu1 %v1981_v49  ;;  %v2370_v56 = vrot.slane %v446_v55, %v450_v53  ;;  %v2372_v57 = vrot.slane %v446_v55, %v454_v54 }
  0x65   : > { %954 = vmatmul.mubr.bf16.gmra.mxu1 %v364_v63  ;;  %850 = vmatprep.mubr.bf16.mxu0 %v367_v0 }
  0x66   : > { %963 = vmatprep.mubr.bf16.mxu1 %v369_v1  ;;  %1761 = vmatpush3.bf16.msra.mxu0 %v1977_v45 }
  0x67   : > { %1762 = vmatprep.subr.bf16.mxu0 %v1978_v46  ;;  %1832 = vmatprep.subr.bf16.mxu1 %v1982_v50 }
  0x68   : > { %1833 = vmatpush3.bf16.msra.mxu1 %v1982_v50 }
  0x6a   : > { %1763 = vmatpush3.bf16.msra.mxu0 %v1979_v47 }
  0x6c   : > { %851 = vmatmul.mubr.bf16.gmra.mxu0 %v366_v10 }
  0x6d   : > { %964 = vmatmul.mubr.bf16.gmra.mxu1 %v368_v11  ;;  %860 = vmatprep.mubr.bf16.mxu0 %v371_v12 }
  0x6e   : > { %973 = vmatprep.mubr.bf16.mxu1 %v373_v13 }
  0x74   : > { %861 = vmatmul.mubr.bf16.gmra.mxu0 %v370_v22 }
  0x75   : > { %974 = vmatmul.mubr.bf16.gmra.mxu1 %v372_v23  ;;  %870 = vmatprep.mubr.bf16.mxu0 %v375_v24 }
  0x76   : > { %983 = vmatprep.mubr.bf16.mxu1 %v377_v25 }
  0x7c   : > { %871 = vmatmul.mubr.bf16.gmra.mxu0 %v374_v34 }
  0x7d   : > { %984 = vmatmul.mubr.bf16.gmra.mxu1 %v376_v35  ;;  %880 = vmatprep.mubr.bf16.mxu0 %v379_v36 }
  0x7e   : > { %993 = vmatprep.mubr.bf16.mxu1 %v381_v37 }
  0x84   : > { %881 = vmatmul.mubr.bf16.gmra.mxu0 %v378_v42 }
  0x85   : > { %994 = vmatmul.mubr.bf16.gmra.mxu1 %v380_v43 }
 0x10c   : > { %v812_v58 = vpop.f32.mrf.mxu0 }
 0x10d   : > { %v925_v59 = vpop.f32.mrf.mxu1  ;;  %v813_v62 = vadd.f32 %v812_v58, %v2370_v56 }
 0x10e   : > { %v814_v60 = vpop.f32.mrf.mxu0 }
 0x10f   : > { %v927_v61 = vpop.f32.mrf.mxu1  ;;  %v815_v63 = vadd.f32 %v814_v60, %v2372_v57  ;;  %v926_v5 = vadd.f32 %v925_v59, %v813_v62 }
 0x110   : > { %v816_v0 = vpop.f32.mrf.mxu0 }
 0x111   : > { %v929_v1 = vpop.f32.mrf.mxu1  ;;  %v817_v2 = vadd.f32 %v816_v0, %v2370_v56  ;;  %v928_v6 = vadd.f32 %v927_v61, %v815_v63  ;;  %v1036_v15 = vmul.f32 0.01, %v926_v5  ;;  %vm1004_vm3 = vcmp.gt.f32.partialorder %v926_v5, 0.0 }
 0x112   : > { %v818_v3 = vpop.f32.mrf.mxu0 }
 0x113   : > { %v931_v4 = vpop.f32.mrf.mxu1  ;;  %v930_v7 = vadd.f32 %v929_v1, %v817_v2  ;;  %v819_v8 = vadd.f32 %v818_v3, %v2372_v57  ;;  %v1037_v16 = vmul.f32 0.01, %v928_v6  ;;  %vm1005_vm1 = vcmp.gt.f32.partialorder %v928_v6, 0.0 }
 0x114   : > { %v822_v9 = vpop.f32.mrf.mxu0  ;;  %v1068_v31 = vsel %vm1004_vm3, %v926_v5, %v1036_v15 }
 0x115   : > { %v935_v10 = vpop.f32.mrf.mxu1  ;;  %v1038_v11 = vmul.f32 0.01, %v930_v7  ;;  %v932_v12 = vadd.f32 %v931_v4, %v819_v8  ;;  %vm1006_vm0 = vcmp.gt.f32.partialorder %v930_v7, 0.0  ;;  %v823_v19 = vadd.f32 %v822_v9, %v2370_v56 }
 0x116   : > { %v824_v13 = vpop.f32.mrf.mxu0  ;;  %v1069_v30 = vsel %vm1005_vm1, %v928_v6, %v1037_v16 }
 0x117   : > { %v937_v14 = vpop.f32.mrf.mxu1  ;;  %v825_v17 = vadd.f32 %v824_v13, %v2372_v57  ;;  %vm1007_vm2 = vcmp.gt.f32.partialorder %v932_v12, 0.0  ;;  %v1039_v18 = vmul.f32 0.01, %v932_v12  ;;  %v1070_v23 = vsel %vm1006_vm0, %v930_v7, %v1038_v11 }
 0x118   : > { %v826_v20 = vpop.f32.mrf.mxu0  ;;  %v936_v32 = vadd.f32 %v935_v10, %v823_v19  ;;  %v1100_v36 = vpack.c.bf16 %v1070_v23, %v1068_v31 }
 0x119   : > { %v939_v21 = vpop.f32.mrf.mxu1  ;;  %v827_v22 = vadd.f32 %v826_v20, %v2370_v56  ;;  %v938_v24 = vadd.f32 %v937_v14, %v825_v17  ;;  %v1071_v27 = vsel %vm1007_vm2, %v932_v12, %v1039_v18 }
 0x11a   : > { %v828_v25 = vpop.f32.mrf.mxu0  ;;  %v1101_v35 = vpack.c.bf16 %v1071_v27, %v1069_v30  ;;  %v1040_v44 = vmul.f32 0.01, %v936_v32  ;;  %vm1008_vm7 = vcmp.gt.f32.partialorder %v936_v32, 0.0 }
 0x11b   : > { %v941_v26 = vpop.f32.mrf.mxu1  ;;  %v940_v28 = vadd.f32 %v939_v21, %v827_v22  ;;  %v829_v29 = vadd.f32 %v828_v25, %v2372_v57  ;;  %v1041_v38 = vmul.f32 0.01, %v938_v24  ;;  %vm1009_vm6 = vcmp.gt.f32.partialorder %v938_v24, 0.0 }
 0x11c   : > { %v832_v33 = vpop.f32.mrf.mxu0  ;;  %1283 = vmatprep.mubr.bf16.mxu0 %v1101_v35  ;;  %v1072_v63 = vsel %vm1008_vm7, %v936_v32, %v1040_v44 }
 0x11d   : > { %v945_v34 = vpop.f32.mrf.mxu1  ;;  %v942_v37 = vadd.f32 %v941_v26, %v829_v29  ;;  %v1042_v39 = vmul.f32 0.01, %v940_v28  ;;  %vm1010_vm4 = vcmp.gt.f32.partialorder %v940_v28, 0.0  ;;  %1284 = vmatmul.mubr.bf16.vlgmr.msra.gmra.mxu0 %v1100_v36  ;;  %v833_v45 = vadd.f32 %v832_v33, %v2370_v56 }
 0x11e   : > { %v834_v40 = vpop.f32.mrf.mxu0  ;;  %v1073_v58 = vsel %vm1009_vm6, %v938_v24, %v1041_v38 }
 0x11f   : > { %v947_v41 = vpop.f32.mrf.mxu1  ;;  %vm1011_vm5 = vcmp.gt.f32.partialorder %v942_v37, 0.0  ;;  %v1043_v42 = vmul.f32 0.01, %v942_v37  ;;  %v835_v43 = vadd.f32 %v834_v40, %v2372_v57  ;;  %v1074_v53 = vsel %vm1010_vm4, %v940_v28, %v1042_v39 }
 0x120   : > { %v836_v46 = vpop.f32.mrf.mxu0  ;;  %v946_v59 = vadd.f32 %v945_v34, %v833_v45  ;;  %v1102_v1 = vpack.c.bf16 %v1074_v53, %v1072_v63 }
 0x121   : > { %v949_v47 = vpop.f32.mrf.mxu1  ;;  %v837_v48 = vadd.f32 %v836_v46, %v2370_v56  ;;  %v948_v49 = vadd.f32 %v947_v41, %v835_v43  ;;  %v1075_v52 = vsel %vm1011_vm5, %v942_v37, %v1043_v42 }
 0x122   : > { %v838_v50 = vpop.f32.mrf.mxu0  ;;  %v1103_v62 = vpack.c.bf16 %v1075_v52, %v1073_v58  ;;  %v1044_v8 = vmul.f32 0.01, %v946_v59  ;;  %vm1012_vm11 = vcmp.gt.f32.partialorder %v946_v59, 0.0 }
 0x123   : > { %v951_v51 = vpop.f32.mrf.mxu1  ;;  %v950_v54 = vadd.f32 %v949_v47, %v837_v48  ;;  %v839_v55 = vadd.f32 %v838_v50, %v2372_v57  ;;  %v1045_v2 = vmul.f32 0.01, %v948_v49  ;;  %vm1013_vm10 = vcmp.gt.f32.partialorder %v948_v49, 0.0 }
 0x124   : > { %v842_v60 = vpop.f32.mrf.mxu0  ;;  %1291 = vmatprep.mubr.bf16.mxu0 %v1103_v62  ;;  %v1076_v25 = vsel %vm1012_vm11, %v946_v59, %v1044_v8 }
 0x125   : > { %v955_v61 = vpop.f32.mrf.mxu1  ;;  %v952_v0 = vadd.f32 %v951_v51, %v839_v55  ;;  %v1046_v3 = vmul.f32 0.01, %v950_v54  ;;  %vm1014_vm8 = vcmp.gt.f32.partialorder %v950_v54, 0.0  ;;  %1292 = vmatmul.mubr.bf16.gmra.mxu0 %v1102_v1  ;;  %v843_v9 = vadd.f32 %v842_v60, %v2370_v56 }
 0x126   : > { %v844_v4 = vpop.f32.mrf.mxu0  ;;  %v1077_v20 = vsel %vm1013_vm10, %v948_v49, %v1045_v2 }
 0x127   : > { %v957_v5 = vpop.f32.mrf.mxu1  ;;  %vm1015_vm9 = vcmp.gt.f32.partialorder %v952_v0, 0.0  ;;  %v1047_v6 = vmul.f32 0.01, %v952_v0  ;;  %v845_v7 = vadd.f32 %v844_v4, %v2372_v57  ;;  %v1078_v17 = vsel %vm1014_vm8, %v950_v54, %v1046_v3 }
 0x128   : > { %v846_v10 = vpop.f32.mrf.mxu0  ;;  %v956_v21 = vadd.f32 %v955_v61, %v843_v9  ;;  %v1104_v27 = vpack.c.bf16 %v1078_v17, %v1076_v25 }
 0x129   : > { %v959_v11 = vpop.f32.mrf.mxu1  ;;  %v847_v12 = vadd.f32 %v846_v10, %v2370_v56  ;;  %v958_v13 = vadd.f32 %v957_v5, %v845_v7  ;;  %v1079_v16 = vsel %vm1015_vm9, %v952_v0, %v1047_v6 }
 0x12a   : > { %v848_v14 = vpop.f32.mrf.mxu0  ;;  %v1105_v24 = vpack.c.bf16 %v1079_v16, %v1077_v20  ;;  %v1048_v34 = vmul.f32 0.01, %v956_v21  ;;  %vm1016_vm15 = vcmp.gt.f32.partialorder %v956_v21, 0.0 }
 0x12b   : > { %v961_v15 = vpop.f32.mrf.mxu1  ;;  %v960_v18 = vadd.f32 %v959_v11, %v847_v12  ;;  %v849_v19 = vadd.f32 %v848_v14, %v2372_v57  ;;  %v1049_v28 = vmul.f32 0.01, %v958_v13  ;;  %vm1017_vm14 = vcmp.gt.f32.partialorder %v958_v13, 0.0 }
 0x12c   : > { %v852_v22 = vpop.f32.mrf.mxu0  ;;  %1299 = vmatprep.mubr.bf16.mxu0 %v1105_v24  ;;  %v1080_v51 = vsel %vm1016_vm15, %v956_v21, %v1048_v34 }
 0x12d   : > { %v965_v23 = vpop.f32.mrf.mxu1  ;;  %v962_v26 = vadd.f32 %v961_v15, %v849_v19  ;;  %v1050_v29 = vmul.f32 0.01, %v960_v18  ;;  %vm1018_vm12 = vcmp.gt.f32.partialorder %v960_v18, 0.0  ;;  %1300 = vmatmul.mubr.bf16.gmra.mxu0 %v1104_v27  ;;  %v853_v35 = vadd.f32 %v852_v22, %v2370_v56 }
 0x12e   : > { %v854_v30 = vpop.f32.mrf.mxu0  ;;  %v1081_v46 = vsel %vm1017_vm14, %v958_v13, %v1049_v28 }
 0x12f   : > { %v967_v31 = vpop.f32.mrf.mxu1  ;;  %vm1019_vm13 = vcmp.gt.f32.partialorder %v962_v26, 0.0  ;;  %v1051_v32 = vmul.f32 0.01, %v962_v26  ;;  %v855_v33 = vadd.f32 %v854_v30, %v2372_v57  ;;  %v1082_v43 = vsel %vm1018_vm12, %v960_v18, %v1050_v29 }
 0x130   : > { %v856_v36 = vpop.f32.mrf.mxu0  ;;  %v966_v47 = vadd.f32 %v965_v23, %v853_v35  ;;  %v1106_v53 = vpack.c.bf16 %v1082_v43, %v1080_v51 }
 0x131   : > { %v969_v37 = vpop.f32.mrf.mxu1  ;;  %v857_v38 = vadd.f32 %v856_v36, %v2370_v56  ;;  %v968_v39 = vadd.f32 %v967_v31, %v855_v33  ;;  %v1083_v42 = vsel %vm1019_vm13, %v962_v26, %v1051_v32 }
 0x132   : > { %v858_v40 = vpop.f32.mrf.mxu0  ;;  %v1107_v50 = vpack.c.bf16 %v1083_v42, %v1081_v46  ;;  %v1052_v62 = vmul.f32 0.01, %v966_v47  ;;  %vm1020_vm3 = vcmp.gt.f32.partialorder %v966_v47, 0.0 }
 0x133   : > { %v971_v41 = vpop.f32.mrf.mxu1  ;;  %v970_v44 = vadd.f32 %v969_v37, %v857_v38  ;;  %v859_v45 = vadd.f32 %v858_v40, %v2372_v57  ;;  %v1053_v54 = vmul.f32 0.01, %v968_v39  ;;  %vm1021_vm2 = vcmp.gt.f32.partialorder %v968_v39, 0.0 }
 0x134   : > { %v862_v48 = vpop.f32.mrf.mxu0  ;;  %1307 = vmatprep.mubr.bf16.mxu0 %v1107_v50  ;;  %v1084_v15 = vsel %vm1020_vm3, %v966_v47, %v1052_v62 }
 0x135   : > { %v975_v49 = vpop.f32.mrf.mxu1  ;;  %v972_v52 = vadd.f32 %v971_v41, %v859_v45  ;;  %v1054_v55 = vmul.f32 0.01, %v970_v44  ;;  %vm1022_vm0 = vcmp.gt.f32.partialorder %v970_v44, 0.0  ;;  %1308 = vmatmul.mubr.bf16.gmra.mxu0 %v1106_v53  ;;  %v863_v63 = vadd.f32 %v862_v48, %v2370_v56 }
 0x136   : > { %v864_v58 = vpop.f32.mrf.mxu0  ;;  %v1085_v10 = vsel %vm1021_vm2, %v968_v39, %v1053_v54 }
 0x137   : > { %v977_v59 = vpop.f32.mrf.mxu1  ;;  %vm1023_vm1 = vcmp.gt.f32.partialorder %v972_v52, 0.0  ;;  %v1055_v60 = vmul.f32 0.01, %v972_v52  ;;  %v865_v61 = vadd.f32 %v864_v58, %v2372_v57  ;;  %v1086_v7 = vsel %vm1022_vm0, %v970_v44, %v1054_v55 }
 0x138   : > { %v866_v0 = vpop.f32.mrf.mxu0  ;;  %v976_v11 = vadd.f32 %v975_v49, %v863_v63  ;;  %v1108_v17 = vpack.c.bf16 %v1086_v7, %v1084_v15  ;;  %v1984_v15 = vld [vmem:[%s2496_s5 + $0x18] sm:$0xff]  }
 0x139   : > { %v979_v1 = vpop.f32.mrf.mxu1  ;;  %v867_v2 = vadd.f32 %v866_v0, %v2370_v56  ;;  %v978_v3 = vadd.f32 %v977_v59, %v865_v61  ;;  %v1087_v6 = vsel %vm1023_vm1, %v972_v52, %v1055_v60 }
 0x13a   : > { %v868_v4 = vpop.f32.mrf.mxu0  ;;  %v1109_v14 = vpack.c.bf16 %v1087_v6, %v1085_v10  ;;  %v1056_v24 = vmul.f32 0.01, %v976_v11  ;;  %vm1024_vm7 = vcmp.gt.f32.partialorder %v976_v11, 0.0 }
 0x13b   : > { %v981_v5 = vpop.f32.mrf.mxu1  ;;  %v980_v8 = vadd.f32 %v979_v1, %v867_v2  ;;  %v869_v9 = vadd.f32 %v868_v4, %v2372_v57  ;;  %v1057_v18 = vmul.f32 0.01, %v978_v3  ;;  %vm1025_vm6 = vcmp.gt.f32.partialorder %v978_v3, 0.0 }
 0x13c   : > { %v872_v12 = vpop.f32.mrf.mxu0  ;;  %1315 = vmatprep.mubr.bf16.mxu0 %v1109_v14  ;;  %v1088_v41 = vsel %vm1024_vm7, %v976_v11, %v1056_v24  ;;  %v1983_v14 = vld [vmem:[%s2496_s5 + $0x20] sm:$0xff]  }
 0x13d   : > { %v985_v13 = vpop.f32.mrf.mxu1  ;;  %v982_v16 = vadd.f32 %v981_v5, %v869_v9  ;;  %v1058_v19 = vmul.f32 0.01, %v980_v8  ;;  %vm1026_vm4 = vcmp.gt.f32.partialorder %v980_v8, 0.0  ;;  %1316 = vmatmul.mubr.bf16.gmra.mxu0 %v1108_v17  ;;  %v873_v25 = vadd.f32 %v872_v12, %v2370_v56  ;;  %1834 = vmatprep.subr.bf16.mxu1 %v1983_v14  ;;  %v1986_v17 = vld [vmem:[%s2496_s5 + $0x8] sm:$0xff]  }
 0x13e   : > { %v874_v20 = vpop.f32.mrf.mxu0  ;;  %v1089_v36 = vsel %vm1025_vm6, %v978_v3, %v1057_v18  ;;  %1835 = vmatpush3.bf16.msra.mxu1 %v1983_v14  ;;  %v1987_v18 = vld [vmem:[%s2496_s5] sm:$0xff]  }
 0x13f   : > { %v987_v21 = vpop.f32.mrf.mxu1  ;;  %vm1027_vm5 = vcmp.gt.f32.partialorder %v982_v16, 0.0  ;;  %v1059_v22 = vmul.f32 0.01, %v982_v16  ;;  %v875_v23 = vadd.f32 %v874_v20, %v2372_v57  ;;  %v1090_v33 = vsel %vm1026_vm4, %v980_v8, %v1058_v19  ;;  %1836 = vmatprep.subr.bf16.mxu1 %v1984_v15  ;;  %v2429_v20 = vld [vmem:[%s2495_s4] ss:$0 sm:$0xff] }
 0x140   : > { %v876_v26 = vpop.f32.mrf.mxu0  ;;  %v986_v37 = vadd.f32 %v985_v13, %v873_v25  ;;  %v1110_v43 = vpack.c.bf16 %v1090_v33, %v1088_v41 }
 0x141   : > { %v989_v27 = vpop.f32.mrf.mxu1  ;;  %v877_v28 = vadd.f32 %v876_v26, %v2370_v56  ;;  %v988_v29 = vadd.f32 %v987_v21, %v875_v23  ;;  %v1091_v32 = vsel %vm1027_vm5, %v982_v16, %v1059_v22  ;;  %v1985_v16 = vld [vmem:[%s2496_s5 + $0x10] sm:$0xff]  }
 0x142   : > { %v878_v30 = vpop.f32.mrf.mxu0  ;;  %v1111_v40 = vpack.c.bf16 %v1091_v32, %v1089_v36  ;;  %v1060_v50 = vmul.f32 0.01, %v986_v37  ;;  %vm1028_vm11 = vcmp.gt.f32.partialorder %v986_v37, 0.0  ;;  %1837 = vmatpush3.bf16.msra.mxu1 %v1984_v15 }
 0x143   : > { %v991_v31 = vpop.f32.mrf.mxu1  ;;  %v990_v34 = vadd.f32 %v989_v27, %v877_v28  ;;  %v879_v35 = vadd.f32 %v878_v30, %v2372_v57  ;;  %v1061_v44 = vmul.f32 0.01, %v988_v29  ;;  %vm1029_vm10 = vcmp.gt.f32.partialorder %v988_v29, 0.0  ;;  %1838 = vmatprep.subr.bf16.mxu1 %v1985_v16 }
 0x144   : > { %v882_v38 = vpop.f32.mrf.mxu0  ;;  %1323 = vmatprep.mubr.bf16.mxu0 %v1111_v40  ;;  %v1092_v3 = vsel %vm1028_vm11, %v986_v37, %v1060_v50 }
 0x145   : > { %v995_v39 = vpop.f32.mrf.mxu1  ;;  %v992_v42 = vadd.f32 %v991_v31, %v879_v35  ;;  %v1062_v45 = vmul.f32 0.01, %v990_v34  ;;  %vm1030_vm8 = vcmp.gt.f32.partialorder %v990_v34, 0.0  ;;  %1324 = vmatmul.mubr.bf16.gmra.mxu0 %v1110_v43  ;;  %v883_v51 = vadd.f32 %v882_v38, %v2370_v56 }
 0x146   : > { %v884_v46 = vpop.f32.mrf.mxu0  ;;  %v1093_v63 = vsel %vm1029_vm10, %v988_v29, %v1061_v44  ;;  %1839 = vmatpush3.bf16.msra.mxu1 %v1985_v16 }
 0x147   : > { %v997_v47 = vpop.f32.mrf.mxu1  ;;  %vm1031_vm9 = vcmp.gt.f32.partialorder %v992_v42, 0.0  ;;  %v1063_v48 = vmul.f32 0.01, %v992_v42  ;;  %v885_v49 = vadd.f32 %v884_v46, %v2372_v57  ;;  %v1094_v60 = vsel %vm1030_vm8, %v990_v34, %v1062_v45  ;;  %1840 = vmatprep.subr.bf16.mxu1 %v1986_v17 }
 0x148   : > { %v886_v52 = vpop.f32.mrf.mxu0  ;;  %v996_v0 = vadd.f32 %v995_v39, %v883_v51  ;;  %v1112_v6 = vpack.c.bf16 %v1094_v60, %v1092_v3 }
 0x149   : > { %v999_v53 = vpop.f32.mrf.mxu1  ;;  %v998_v54 = vadd.f32 %v997_v47, %v885_v49  ;;  %v887_v55 = vadd.f32 %v886_v52, %v2370_v56  ;;  %v1095_v59 = vsel %vm1031_vm9, %v992_v42, %v1063_v48 }
 0x14a   : > { %v888_v58 = vpop.f32.mrf.mxu0  ;;  %v1113_v2 = vpack.c.bf16 %v1095_v59, %v1093_v63  ;;  %v1064_v8 = vmul.f32 0.01, %v996_v0  ;;  %vm1032_vm15 = vcmp.gt.f32.partialorder %v996_v0, 0.0  ;;  %1841 = vmatpush3.bf16.msra.mxu1 %v1986_v17 }
 0x14b   : > { %v1000_v61 = vadd.f32 %v999_v53, %v887_v55  ;;  %v889_v62 = vadd.f32 %v888_v58, %v2372_v57  ;;  %v1001_v1 = vpop.f32.mrf.mxu1  ;;  %v1065_v4 = vmul.f32 0.01, %v998_v54  ;;  %vm1033_vm12 = vcmp.gt.f32.partialorder %v998_v54, 0.0  ;;  %1842 = vmatprep.subr.bf16.mxu1 %v1987_v18 }
 0x14c   : > { %1331 = vmatprep.mubr.bf16.mxu0 %v1113_v2  ;;  %v1096_v12 = vsel %vm1032_vm15, %v996_v0, %v1064_v8 }
 0x14d   : > { %v1002_v5 = vadd.f32 %v1001_v1, %v889_v62  ;;  %v1066_v7 = vmul.f32 0.01, %v1000_v61  ;;  %vm1034_vm13 = vcmp.gt.f32.partialorder %v1000_v61, 0.0  ;;  %1332 = vmatmul.mubr.bf16.gmra.mxu0 %v1112_v6  ;;  %v1097_v9 = vsel %vm1033_vm12, %v998_v54, %v1065_v4 }
 0x14e   : > { %1843 = vmatpush3.bf16.msra.mxu1 %v1987_v18 }
 0x14f   : > { %vm1035_vm14 = vcmp.gt.f32.partialorder %v1002_v5, 0.0  ;;  %v1067_v56 = vmul.f32 0.01, %v1002_v5  ;;  %v1098_v11 = vsel %vm1034_vm13, %v1000_v61, %v1066_v7 }
 0x150   : > { %v1114_v13 = vpack.c.bf16 %v1098_v11, %v1096_v12 }
 0x151   : > { %v1099_v10 = vsel %vm1035_vm14, %v1002_v5, %v1067_v56 }
 0x152   : > { %v1115_v57 = vpack.c.bf16 %v1099_v10, %v1097_v9 }
 0x154   : > { %1339 = vmatprep.mubr.bf16.mxu0 %v1115_v57 }
 0x155   : > { %1340 = vmatmul.mubr.bf16.gmra.mxu0 %v1114_v13 }
 0x1dd   : > { %v1764_v19 = vpop.f32.mrf.mxu0 }
 0x1df   : > { %v1765_v21 = vpop.f32.mrf.mxu0 }
 0x1e0   : > { %v1766_v22 = vadd.f32 %v1765_v21, %v1764_v19 }
 0x1e1   : > { %v1767_v23 = vpop.f32.mrf.mxu0 }
 0x1e2   : > { %v1286_v24 = vadd.f32 %v1766_v22, %v2429_v20 }
 0x1e3   : > { %v1768_v25 = vpop.f32.mrf.mxu0 }
 0x1e4   : > { %v1769_v26 = vadd.f32 %v1768_v25, %v1767_v23  ;;  %v1364_v28 = vmul.f32 0.01, %v1286_v24  ;;  %vm1348_vm0 = vcmp.gt.f32.partialorder %v1286_v24, 0.0 }
 0x1e5   : > { %v1770_v27 = vpop.f32.mrf.mxu0 }
 0x1e6   : > { %v1289_v29 = vadd.f32 %v1769_v26, %v2429_v20  ;;  %v1380_v35 = vsel %vm1348_vm0, %v1286_v24, %v1364_v28  ;;  %vm1572_vm0 = vcmask 15360  }
 0x1e7   : > { %v1771_v30 = vpop.f32.mrf.mxu0 }
 0x1e8   : > { %vm1349_vm1 = vcmp.gt.f32.partialorder %v1289_v29, 0.0  ;;  %v1365_v31 = vmul.f32 0.01, %v1289_v29  ;;  %v1772_v32 = vadd.f32 %v1771_v30, %v1770_v27 }
 0x1e9   : > { %v1773_v33 = vpop.f32.mrf.mxu0 }
 0x1ea   : > { %v1294_v34 = vadd.f32 %v1772_v32, %v2429_v20  ;;  %v1381_v36 = vsel %vm1349_vm1, %v1289_v29, %v1365_v31 }
 0x1eb   : > { %v1774_v37 = vpop.f32.mrf.mxu0  ;;  %v1396_v38 = vpack.c.bf16 %v1381_v36, %v1380_v35 }
 0x1ec   : > { %v1775_v39 = vadd.f32 %v1774_v37, %v1773_v33  ;;  %v1366_v41 = vmul.f32 0.01, %v1294_v34  ;;  %vm1350_vm2 = vcmp.gt.f32.partialorder %v1294_v34, 0.0 }
 0x1ed   : > { %v1776_v40 = vpop.f32.mrf.mxu0  ;;  %1844 = vmatprep.mubr.bf16.mxu1 %v1396_v38 }
 0x1ee   : > { %v1297_v42 = vadd.f32 %v1775_v39, %v2429_v20  ;;  %v1382_v47 = vsel %vm1350_vm2, %v1294_v34, %v1366_v41 }
 0x1ef   : > { %v1777_v43 = vpop.f32.mrf.mxu0 }
 0x1f0   : > { %vm1351_vm3 = vcmp.gt.f32.partialorder %v1297_v42, 0.0  ;;  %v1367_v44 = vmul.f32 0.01, %v1297_v42  ;;  %v1778_v45 = vadd.f32 %v1777_v43, %v1776_v40 }
 0x1f1   : > { %v1779_v46 = vpop.f32.mrf.mxu0 }
 0x1f2   : > { %v1383_v48 = vsel %vm1351_vm3, %v1297_v42, %v1367_v44  ;;  %v1302_v49 = vadd.f32 %v1778_v45, %v2429_v20 }
 0x1f3   : > { %v1397_v50 = vpack.c.bf16 %v1383_v48, %v1382_v47  ;;  %v1780_v51 = vpop.f32.mrf.mxu0 }
 0x1f4   : > { %v1781_v52 = vadd.f32 %v1780_v51, %v1779_v46  ;;  %v1368_v54 = vmul.f32 0.01, %v1302_v49  ;;  %vm1352_vm4 = vcmp.gt.f32.partialorder %v1302_v49, 0.0 }
 0x1f5   : > { %v1782_v53 = vpop.f32.mrf.mxu0  ;;  %1845 = vmatmul.mubr.bf16.vlgmr.msra.gmra.mxu1 %v1397_v50 }
 0x1f6   : > { %v1305_v55 = vadd.f32 %v1781_v52, %v2429_v20  ;;  %v1384_v63 = vsel %vm1352_vm4, %v1302_v49, %v1368_v54 }
 0x1f7   : > { %v1783_v58 = vpop.f32.mrf.mxu0 }
 0x1f8   : > { %vm1353_vm5 = vcmp.gt.f32.partialorder %v1305_v55, 0.0  ;;  %v1369_v59 = vmul.f32 0.01, %v1305_v55  ;;  %v1784_v60 = vadd.f32 %v1783_v58, %v1782_v53 }
 0x1f9   : > { %v1785_v61 = vpop.f32.mrf.mxu0 }
 0x1fa   : > { %v1310_v62 = vadd.f32 %v1784_v60, %v2429_v20  ;;  %v1385_v0 = vsel %vm1353_vm5, %v1305_v55, %v1369_v59 }
 0x1fb   : > { %v1786_v1 = vpop.f32.mrf.mxu0  ;;  %v1398_v2 = vpack.c.bf16 %v1385_v0, %v1384_v63  ;;  %v1736_v63 = vld [vmem:[%s2497_s6] ss:$0 sm:$0xff] }
 0x1fc   : > { %v1787_v3 = vadd.f32 %v1786_v1, %v1785_v61  ;;  %v1370_v5 = vmul.f32 0.01, %v1310_v62  ;;  %vm1354_vm6 = vcmp.gt.f32.partialorder %v1310_v62, 0.0 }
 0x1fd   : > { %v1788_v4 = vpop.f32.mrf.mxu0  ;;  %1848 = vmatprep.mubr.bf16.mxu1 %v1398_v2 }
 0x1fe   : > { %v1313_v6 = vadd.f32 %v1787_v3, %v2429_v20  ;;  %v1386_v57 = vsel %vm1354_vm6, %v1310_v62, %v1370_v5 }
 0x1ff   : > { %v1789_v7 = vpop.f32.mrf.mxu0 }
 0x200   : > { %vm1355_vm7 = vcmp.gt.f32.partialorder %v1313_v6, 0.0  ;;  %v1371_v56 = vmul.f32 0.01, %v1313_v6  ;;  %v1790_v8 = vadd.f32 %v1789_v7, %v1788_v4 }
 0x201   : > { %v1791_v9 = vpop.f32.mrf.mxu0 }
 0x202   : > { %v1318_v10 = vadd.f32 %v1790_v8, %v2429_v20  ;;  %v1387_v11 = vsel %vm1355_vm7, %v1313_v6, %v1371_v56 }
 0x203   : > { %v1792_v12 = vpop.f32.mrf.mxu0  ;;  %v1399_v13 = vpack.c.bf16 %v1387_v11, %v1386_v57 }
 0x204   : > { %v1793_v14 = vadd.f32 %v1792_v12, %v1791_v9  ;;  %v1372_v16 = vmul.f32 0.01, %v1318_v10  ;;  %vm1356_vm8 = vcmp.gt.f32.partialorder %v1318_v10, 0.0 }
 0x205   : > { %v1794_v15 = vpop.f32.mrf.mxu0  ;;  %1849 = vmatmul.mubr.bf16.gmra.mxu1 %v1399_v13 }
 0x206   : > { %v1321_v17 = vadd.f32 %v1793_v14, %v2429_v20  ;;  %v1388_v24 = vsel %vm1356_vm8, %v1318_v10, %v1372_v16 }
 0x207   : > { %v1795_v18 = vpop.f32.mrf.mxu0 }
 0x208   : > { %vm1357_vm9 = vcmp.gt.f32.partialorder %v1321_v17, 0.0  ;;  %v1373_v19 = vmul.f32 0.01, %v1321_v17  ;;  %v1796_v21 = vadd.f32 %v1795_v18, %v1794_v15 }
 0x209   : > { %v1797_v22 = vpop.f32.mrf.mxu0 }
 0x20a   : > { %v1326_v23 = vadd.f32 %v1796_v21, %v2429_v20  ;;  %v1389_v25 = vsel %vm1357_vm9, %v1321_v17, %v1373_v19 }
 0x20b   : > { %v1798_v26 = vpop.f32.mrf.mxu0  ;;  %v1400_v27 = vpack.c.bf16 %v1389_v25, %v1388_v24 }
 0x20c   : > { %v1799_v28 = vadd.f32 %v1798_v26, %v1797_v22  ;;  %v1374_v30 = vmul.f32 0.01, %v1326_v23  ;;  %vm1358_vm10 = vcmp.gt.f32.partialorder %v1326_v23, 0.0 }
 0x20d   : > { %v1800_v29 = vpop.f32.mrf.mxu0  ;;  %1852 = vmatprep.mubr.bf16.mxu1 %v1400_v27 }
 0x20e   : > { %v1329_v31 = vadd.f32 %v1799_v28, %v2429_v20  ;;  %v1390_v37 = vsel %vm1358_vm10, %v1326_v23, %v1374_v30 }
 0x20f   : > { %v1801_v32 = vpop.f32.mrf.mxu0 }
 0x210   : > { %vm1359_vm11 = vcmp.gt.f32.partialorder %v1329_v31, 0.0  ;;  %v1375_v33 = vmul.f32 0.01, %v1329_v31  ;;  %v1802_v34 = vadd.f32 %v1801_v32, %v1800_v29 }
 0x211   : > { %v1803_v35 = vpop.f32.mrf.mxu0 }
 0x212   : > { %v1334_v36 = vadd.f32 %v1802_v34, %v2429_v20  ;;  %v1391_v38 = vsel %vm1359_vm11, %v1329_v31, %v1375_v33 }
 0x213   : > { %v1804_v39 = vpop.f32.mrf.mxu0  ;;  %v1401_v40 = vpack.c.bf16 %v1391_v38, %v1390_v37 }
 0x214   : > { %v1805_v41 = vadd.f32 %v1804_v39, %v1803_v35  ;;  %v1376_v43 = vmul.f32 0.01, %v1334_v36  ;;  %vm1360_vm12 = vcmp.gt.f32.partialorder %v1334_v36, 0.0 }
 0x215   : > { %v1806_v42 = vpop.f32.mrf.mxu0  ;;  %1853 = vmatmul.mubr.bf16.gmra.mxu1 %v1401_v40 }
 0x216   : > { %v1337_v44 = vadd.f32 %v1805_v41, %v2429_v20  ;;  %v1392_v50 = vsel %vm1360_vm12, %v1334_v36, %v1376_v43 }
 0x217   : > { %v1807_v45 = vpop.f32.mrf.mxu0 }
 0x218   : > { %vm1361_vm13 = vcmp.gt.f32.partialorder %v1337_v44, 0.0  ;;  %v1377_v46 = vmul.f32 0.01, %v1337_v44  ;;  %v1808_v47 = vadd.f32 %v1807_v45, %v1806_v42 }
 0x219   : > { %v1809_v48 = vpop.f32.mrf.mxu0 }
 0x21a   : > { %v1342_v49 = vadd.f32 %v1808_v47, %v2429_v20  ;;  %v1393_v51 = vsel %vm1361_vm13, %v1337_v44, %v1377_v46 }
 0x21b   : > { %v1810_v52 = vpop.f32.mrf.mxu0  ;;  %v1402_v53 = vpack.c.bf16 %v1393_v51, %v1392_v50 }
 0x21c   : > { %v1811_v54 = vadd.f32 %v1810_v52, %v1809_v48  ;;  %v1378_v55 = vmul.f32 0.01, %v1342_v49  ;;  %vm1362_vm14 = vcmp.gt.f32.partialorder %v1342_v49, 0.0 }
 0x21d   : > { %1856 = vmatprep.mubr.bf16.mxu1 %v1402_v53 }
 0x21e   : > { %v1345_v58 = vadd.f32 %v1811_v54, %v2429_v20  ;;  %v1394_v60 = vsel %vm1362_vm14, %v1342_v49, %v1378_v55 }
 0x220   : > { %vm1363_vm15 = vcmp.gt.f32.partialorder %v1345_v58, 0.0  ;;  %v1379_v59 = vmul.f32 0.01, %v1345_v58 }
 0x222   : > { %v1395_v61 = vsel %vm1363_vm15, %v1345_v58, %v1379_v59 }
 0x223   : > { %v1403_v62 = vpack.c.bf16 %v1395_v61, %v1394_v60 }
 0x225   : > { %1857 = vmatmul.mubr.bf16.gmra.mxu1 %v1403_v62 }
 0x2b5   : > { %v1846_v20 = vpop.f32.mrf.mxu1 }
 0x2b6   : > { %v1518_v0 = vadd.f32 %v1846_v20, %v1736_v63 }
 0x2b7   : > { %v1509_v1 = vpop.f32.mrf.mxu1 }
 0x2b8   : > { %1575 = vst.msk [vmem:[%s2454_s29 + $0x10] sm:$0xff] %vm1572_vm0, %v1518_v0  ;;  %v1510_v2 = vadd.f32 %v1736_v63, %v1509_v1 }
 0x2b9   : > { %v1847_v3 = vpop.f32.mrf.mxu1 }
 0x2ba   : > { %1573 = vst.msk [vmem:[%s2454_s29] sm:$0xff] %vm1572_vm0, %v1510_v2  ;;  %v1521_v4 = vadd.f32 %v1847_v3, %v1736_v63 }
 0x2bb   : > { %v1512_v5 = vpop.f32.mrf.mxu1 }
 0x2bc   : > { %1576 = vst.msk [vmem:[%s2454_s29 + $0x18] sm:$0xff] %vm1572_vm0, %v1521_v4  ;;  %v1513_v6 = vadd.f32 %v1736_v63, %v1512_v5 }
 0x2be   : > { %1574 = vst.msk [vmem:[%s2454_s29 + $0x8] sm:$0xff] %vm1572_vm0, %v1513_v6 }
 0x2c5   : > { %v1850_v7 = vpop.f32.mrf.mxu1 }
 0x2c6   : > { %v1534_v56 = vadd.f32 %v1850_v7, %v1736_v63 }
 0x2c7   : > { %v1525_v8 = vpop.f32.mrf.mxu1 }
 0x2c8   : > { %1579 = vst.msk [vmem:[%s2454_s29 + $0x30] sm:$0xff] %vm1572_vm0, %v1534_v56  ;;  %v1526_v9 = vadd.f32 %v1736_v63, %v1525_v8 }
 0x2c9   : > { %v1851_v10 = vpop.f32.mrf.mxu1 }
 0x2ca   : > { %1577 = vst.msk [vmem:[%s2454_s29 + $0x20] sm:$0xff] %vm1572_vm0, %v1526_v9  ;;  %v1537_v57 = vadd.f32 %v1851_v10, %v1736_v63 }
 0x2cb   : > { %v1528_v11 = vpop.f32.mrf.mxu1 }
 0x2cc   : > { %1580 = vst.msk [vmem:[%s2454_s29 + $0x38] sm:$0xff] %vm1572_vm0, %v1537_v57  ;;  %v1529_v12 = vadd.f32 %v1736_v63, %v1528_v11 }
 0x2ce   : > { %1578 = vst.msk [vmem:[%s2454_s29 + $0x28] sm:$0xff] %vm1572_vm0, %v1529_v12 }
 0x2d5   : > { %v1854_v13 = vpop.f32.mrf.mxu1 }
 0x2d6   : > { %v1550_v14 = vadd.f32 %v1854_v13, %v1736_v63 }
 0x2d7   : > { %v1541_v15 = vpop.f32.mrf.mxu1 }
 0x2d8   : > { %1583 = vst.msk [vmem:[%s2454_s29 + $0x50] sm:$0xff] %vm1572_vm0, %v1550_v14  ;;  %v1542_v16 = vadd.f32 %v1736_v63, %v1541_v15 }
 0x2d9   : > { %v1855_v17 = vpop.f32.mrf.mxu1 }
 0x2da   : > { %1581 = vst.msk [vmem:[%s2454_s29 + $0x40] sm:$0xff] %vm1572_vm0, %v1542_v16  ;;  %v1553_v18 = vadd.f32 %v1855_v17, %v1736_v63 }
 0x2db   : > { %v1544_v19 = vpop.f32.mrf.mxu1 }
 0x2dc   : > { %1584 = vst.msk [vmem:[%s2454_s29 + $0x58] sm:$0xff] %vm1572_vm0, %v1553_v18  ;;  %v1545_v21 = vadd.f32 %v1736_v63, %v1544_v19 }
 0x2de   : > { %1582 = vst.msk [vmem:[%s2454_s29 + $0x48] sm:$0xff] %vm1572_vm0, %v1545_v21 }
 0x2e5   : > { %v1858_v22 = vpop.f32.mrf.mxu1 }
 0x2e6   : > { %v1566_v23 = vadd.f32 %v1858_v22, %v1736_v63 }
 0x2e7   : > { %v1557_v24 = vpop.f32.mrf.mxu1 }
 0x2e8   : > { %1587 = vst.msk [vmem:[%s2454_s29 + $0x70] sm:$0xff] %vm1572_vm0, %v1566_v23  ;;  %v1558_v25 = vadd.f32 %v1736_v63, %v1557_v24 }
 0x2e9   : > { %v1859_v26 = vpop.f32.mrf.mxu1 }
 0x2ea   : > { %1585 = vst.msk [vmem:[%s2454_s29 + $0x60] sm:$0xff] %vm1572_vm0, %v1558_v25  ;;  %v1569_v27 = vadd.f32 %v1859_v26, %v1736_v63 }
 0x2eb   : > { %v1560_v28 = vpop.f32.mrf.mxu1 }
 0x2ec   : > { %1588 = vst.msk [vmem:[%s2454_s29 + $0x78] sm:$0xff] %vm1572_vm0, %v1569_v27  ;;  %v1561_v29 = vadd.f32 %v1736_v63, %v1560_v28 }
 0x2ee   : > { %1586 = vst.msk [vmem:[%s2454_s29 + $0x68] sm:$0xff] %vm1572_vm0, %v1561_v29 }
 0x2ef PF: > { %s17_s24 = sadd.s32 1, %s1994_s24  }
 0x2f0   : > { %p14_p4 = scmp.ge.s32.totalorder %s17_s24, 4  }
 0x2f2   :  { %16 = sbr.rel (!%p14_p4) target bundleno = 1 (0x1), region = 78 }

</bundles_post_ra>
